<compile_context>
chip_gen: v5e
topology: v5e:2x2
jax: 0.10.0
libtpu: 0.0.40
codegen_flags: <defaults>
</compile_context>

<pallas_src>
import math

import jax
import jax.numpy as jnp
from jax.experimental import pallas as pl
from jax.experimental.pallas import tpu as pltpu


def fourier_filter_kernel(w_ref, xt_ref, phase_ref, o_ref):
    """One lane-tile of the transposed problem.

    w_ref:     (L, K)   bf16   scaled frequency, transposed (grid-invariant)
    xt_ref:    (K, tm)  bf16   input points, transposed (batch on lanes)
    phase_ref: (L, 1)   f32    phase column (grid-invariant)
    o_ref:     (L, tm)  f32    sin(W_T @ x_T + phase), batch on lanes
    """
    z = jnp.dot(w_ref[...], xt_ref[...], preferred_element_type=jnp.float32)
    # Phase add + sin in f32 (VPU/EUP); store is lane-dense (last dim >= 128).
    o_ref[...] = jnp.sin(z + phase_ref[...]).astype(o_ref.dtype)


def make_fourier_filter_params(frequency, phase, weight_scale,
                               compute_dtype=jnp.bfloat16):
    """Init-time parameter prep — done once, not on every forward call."""
    w_t = (2.0 * math.pi * weight_scale) * jnp.asarray(frequency, jnp.float32)
    w_t = w_t.T.astype(compute_dtype)                            # (L, K)
    phase_col = jnp.asarray(phase, jnp.float32).reshape(-1, 1)   # (L, 1)
    return w_t, phase_col


def fourier_filter(x, w_t, phase_col, *, tm=512):
    """x: (M, K) f32;  w_t: (L, K);  phase_col: (L, 1) f32  ->  (M, L) f32."""
    M, K = x.shape
    L, Kw = w_t.shape
    assert K == Kw and phase_col.shape == (L, 1)

    # Lane-axis tile of the batch dim: multiple of 128, or the full dim.
    if tm >= M:
        tm = M
    else:
        tm = max(128, (tm // 128) * 128)
    grid = (pl.cdiv(M, tm),)

    # Transpose + cast x so batch is the (dense) lane axis of the matmul RHS;
    # fuses into a single XLA transpose pass under jit.
    x_t = x.T.astype(w_t.dtype)                                  # (K, M)

    out_t = pl.pallas_call(
        fourier_filter_kernel,
        out_shape=jax.ShapeDtypeStruct((L, M), jnp.float32),
        grid_spec=pltpu.PrefetchScalarGridSpec(
            num_scalar_prefetch=0,
            grid=grid,
            in_specs=[
                # Grid-invariant weight / phase: a few hundred bytes resident,
                # so default double-buffering costs nothing.  For production-
                # size layer_size, tile L with a second grid axis instead of
                # keeping the full weight resident.
                pl.BlockSpec((L, K), lambda i: (0, 0)),
                # x_T tile: batch on lanes -> dense DMA, dense vregs.
                pl.BlockSpec((K, tm), lambda i: (0, i)),
                pl.BlockSpec((L, 1), lambda i: (0, 0)),
            ],
            # Lane-dense output tile (last dim = tm, a multiple of 128 or full M).
            out_specs=pl.BlockSpec((L, tm), lambda i: (0, i)),
        ),
        compiler_params=pltpu.CompilerParams(
            dimension_semantics=("parallel",),
            # Explicit VMEM budget: tiles here are tens of KiB, well inside
            # v7x's 64 MiB physical / 32 MiB scoped limit.
            vmem_limit_bytes=32 * 1024 * 1024,
        ),
    )(w_t, x_t, phase_col)

    # Back to the module-native (batch, layer_size) layout.
    return out_t.T


if __name__ == "__main__":
    # Module hyperparameters (consistent with the PyTorch __init__).
    in_features = 4
    layer_size = 32
    nr_layers = 3
    input_scale = 10.0
    weight_scale = input_scale / math.sqrt(nr_layers + 1)

    batch = 256  # small demo batch; tm=128 -> grid=(2,) so both v7x TCs get work

    key = jax.random.PRNGKey(0)
    kx, kf, kp = jax.random.split(key, 3)

    # Deterministic init matching torch's reset_parameters():
    #   frequency: xavier_uniform_  -> U(-b, b), b = sqrt(6/(fan_in+fan_out))
    #   phase:     U(-pi, pi)
    bound = math.sqrt(6.0 / (in_features + layer_size))
    frequency = jax.random.uniform(
        kf, (in_features, layer_size), jnp.float32, -bound, bound)
    phase = jax.random.uniform(
        kp, (layer_size,), jnp.float32, -math.pi, math.pi)
    x = jax.random.uniform(kx, (batch, in_features), jnp.float32, -1.0, 1.0)

    # Init-time parameter prep (hoisted out of the per-call path).
    w_t, phase_col = make_fourier_filter_params(frequency, phase, weight_scale)

    fwd = jax.jit(fourier_filter, static_argnames=("tm",))
    out = fwd(x, w_t, phase_col, tm=128)
    out = jax.block_until_ready(out)
    assert out.shape == (batch, layer_size)

    # Strict check vs a reference using the SAME bf16 operand quantization
    # (isolates kernel correctness from the intended bf16 rounding).
    xq = x.astype(jnp.bfloat16).astype(jnp.float32)
    wq = w_t.astype(jnp.float32).T                         # (K, L), exact bf16 values
    ref_q = jnp.sin(
        jnp.dot(xq, wq, precision=jax.lax.Precision.HIGHEST) + phase)
    assert jnp.allclose(out, ref_q, atol=1e-4, rtol=1e-4)

    # Loose sanity check vs the pure-f32 module forward: the only difference is
    # bf16 rounding of the matmul operands (bounded, K=4).
    ref_f32 = jnp.sin(x @ (2.0 * math.pi * weight_scale * frequency) + phase)
    assert float(jnp.max(jnp.abs(out - ref_f32))) < 0.15

    print("KERNEL_OK")
</pallas_src>

<mosaic_0001>
module attributes {stable_mosaic.version = 11 : i64} {
  func.func @fourier_filter_kernel(%arg0: i32, %arg1: memref<32x4xbf16, #tpu.memory_space<vmem>>, %arg2: memref<4x128xbf16, #tpu.memory_space<vmem>>, %arg3: memref<32x1xf32, #tpu.memory_space<vmem>>, %arg4: memref<32x128xf32, #tpu.memory_space<vmem>>) attributes {dimension_semantics = [#tpu.dimension_semantics<parallel>], iteration_bounds = array<i64: 2>, scalar_prefetch = 0 : i64, scratch_operands = 0 : i64, tpu.core_type = #tpu.core_type<tc>, window_params = [{pipeline_mode = #tpu.pipeline_mode<synchronous>, transform_indices = @transform_0, window_bounds = array<i64: 32, 4>}, {transform_indices = @transform_1, window_bounds = array<i64: 4, 128>}, {pipeline_mode = #tpu.pipeline_mode<synchronous>, transform_indices = @transform_2, window_bounds = array<i64: 32, 1>}, {transform_indices = @transform_3, window_bounds = array<i64: 32, 128>}]} {
    %c0 = arith.constant 0 : index
    %c0_0 = arith.constant 0 : index
    %0 = vector.load %arg1[%c0, %c0_0] : memref<32x4xbf16, #tpu.memory_space<vmem>>, vector<32x4xbf16>
    %c0_1 = arith.constant 0 : index
    %c0_2 = arith.constant 0 : index
    %1 = vector.load %arg2[%c0_1, %c0_2] : memref<4x128xbf16, #tpu.memory_space<vmem>>, vector<4x128xbf16>
    %cst = arith.constant dense<0.000000e+00> : vector<32x128xf32>
    %2 = tpu.matmul %0, %1, %cst {dimension_numbers = #tpu.dot_dimension_numbers<[1], [0], [0], [1], [0, 0, 1, 1], [], []>} : vector<32x4xbf16>, vector<4x128xbf16>, vector<32x128xf32> -> vector<32x128xf32>
    %c0_3 = arith.constant 0 : index
    %c0_4 = arith.constant 0 : index
    %3 = vector.load %arg3[%c0_3, %c0_4] : memref<32x1xf32, #tpu.memory_space<vmem>>, vector<32x1xf32>
    %4 = vector.broadcast %3 : vector<32x1xf32> to vector<32x128xf32>
    %5 = arith.addf %2, %4 : vector<32x128xf32>
    %6 = math.sin %5 : vector<32x128xf32>
    %c0_5 = arith.constant 0 : index
    %c0_6 = arith.constant 0 : index
    %7 = vector.load %arg4[%c0_5, %c0_6] : memref<32x128xf32, #tpu.memory_space<vmem>>, vector<32x128xf32>
    tpu.vector_store %arg4[%c0_5, %c0_6], %6 {strides = array<i32>} : memref<32x128xf32, #tpu.memory_space<vmem>>, vector<32x128xf32>,
    return
  }
  func.func @transform_0(%arg0: i32) -> (i32, i32) {
    %c0_i32 = arith.constant 0 : i32
    %c0_i32_0 = arith.constant 0 : i32
    %c0_i32_1 = arith.constant 0 : i32
    return %c0_i32, %c0_i32_0 : i32, i32
  }
  func.func @transform_1(%arg0: i32) -> (i32, i32) {
    %c0_i32 = arith.constant 0 : i32
    %c0_i32_0 = arith.constant 0 : i32
    return %c0_i32, %arg0 : i32, i32
  }
  func.func @transform_2(%arg0: i32) -> (i32, i32) {
    %c0_i32 = arith.constant 0 : i32
    %c0_i32_0 = arith.constant 0 : i32
    %c0_i32_1 = arith.constant 0 : i32
    return %c0_i32, %c0_i32_0 : i32, i32
  }
  func.func @transform_3(%arg0: i32) -> (i32, i32) {
    %c0_i32 = arith.constant 0 : i32
    %c0_i32_0 = arith.constant 0 : i32
    return %c0_i32, %arg0 : i32, i32
  }
}

</mosaic_0001>

<bundles_post_ra>
// kernel: fourier_filter.1
= control target key start
LH: loop header
LB: loop body
LE: loop exit
PB: predicated region body
PF: predicated region fallthrough
CT: control target
= control target key end

     0   :  { %8 = vsyncpa [#allocation3], 0  ;;  %s1663_s0 = inlined_call_operand.vmem [shape: bf16[32,4], index: 0, kind: input, shape index: {}]   ;;  %s1664_s1 = inlined_call_operand.vmem [shape: bf16[4,256], index: 1, kind: input, shape index: {}]   ;;  %s1665_s2 = inlined_call_operand.vmem [shape: f32[32,1], index: 2, kind: input, shape index: {}]   ;;  %s1666_s3 = inlined_call_operand.hbm [shape: f32[32,256], index: 3, kind: output, shape index: {}]  }
   0x1   :  { %10 = vsyncpa [#allocation3 + $0x1], 0  ;;  %s1117_s12 = smov 0   ;;  %s1119_s13 = smov 0  }
   0x2   :  { %s1121_s14 = smov 0   ;;  %s1123_s15 = smov 0  }
   0x3 LB: > { %s1138_s16 = sadd.s32 4294967295, %s1085_s15   ;;  %s937_s17 = sadd.s32 4294967294, %s1085_s15   ;;  %s1085_s15 = sphi %s1123_s15, %s1678_s15   ;;  %s1081_s14 = sphi %s1121_s14, %s1677_s14   ;;  %s1077_s13 = sphi %s1119_s13, %s1676_s13   ;;  %s1073_s12 = sphi %s1117_s12, %s1675_s12  }
   0x4   : > { %s1142_s18 = sadd.s32 1, %s1085_s15   ;;  %s91_s19 = sadd.s32 1, %s1081_s14 }
   0x5   : > { %s88_s20 = ssub.s32 %s1085_s15, %s1142_s18  ;;  %p101_p0 = scmp.ne.s32.totalorder %s1081_s14, %s1077_s13 }
   0x6   : > { %p89_p1 = scmp.eq.s32.totalorder %s88_s20, 0  ;;  %p102_p2 = scmp.eq.s32.totalorder %s1138_s16, 1 }
   0x7   : > { %p107_p3 = scmp.ne.s32.totalorder %s1077_s13, %s1073_s12  ;;  %p108_p4 = scmp.eq.s32.totalorder %s937_s17, 1 }
   0x8   : > { %s1153_s21 = scalar_select %p89_p1, %s1081_s14, %s91_s19  }
   0x9   : > { %p1155_p5 = por %p102_p2, %p101_p0  ;;  %p1159_p6 = por %p108_p4, %p107_p3 }
   0xa   : > { %p940_p7 = scmp.ge.s32.totalorder %s1085_s15, 1  ;;  %p139_p8 = scmp.lt.s32.totalorder %s1085_s15, 3 }
   0xc   : > { %p140_p9 = pnand %p940_p7, %p139_p8 }
   0xd   : > { %p162_p10 = scmp.lt.s32.totalorder (!%p140_p9), %s1138_s16, 1  ;;  %s159_s20 = sand.u32 (!%p140_p9), 1, %s1077_s13  }
   0xe   : > { %143 = sbr.rel (%p140_p9) target bundleno = 354 (0x162), region = 32  ;;  %s941_s24 = sshll.u32 (!%p140_p9), %s159_s20, 5 }
   0xf   : > { %s1510_s25 = scalar_lea.vmem (!%p140_p9), [#allocation2], %s941_s24  ;;  %s966_s26 = sshll.u32 (!%p140_p9), %s1138_s16, 3 }
  0x10   : > { %s872_s30 = sshll.u32 (!%p140_p9), %s1510_s25, 4  ;;  %s1043_s9 = scalar_lea.hbm (!%p140_p9), %s1666_s3, 64  ;;  %s1629_s30 = int_to_ptr.vmem [resolvable:$true] %s872_s30 }
  0x13   : > { %v1087_v0 = vmov 0   ;;  %v174_v1 = vld [vmem:[%s1665_s2 + $0x10] sm:$0xff]  ;;  %v172_v2 = vld [vmem:[%s1665_s2] sm:$0xff]  ;;  %s163_s28 = scalar_select %p162_p10, %s1138_s16, 1  ;;  %vm213_vm0 = vcmask 1041408   ;;  %v970_v6 = vld [vmem:[%s1663_s0 + $0x8] sm:$0xff] }
  0x14   : > { %1022 = vset.pattern.permute.xlu1 %v1087_v0  ;;  %1021 = vset.pattern.permute.xlu0 %v1087_v0  ;;  %v969_v4 = vld [vmem:[%s1663_s0] sm:$0xff]  ;;  %v175_v7 = vld [vmem:[%s1665_s2 + $0x18] sm:$0xff]  ;;  %v173_v8 = vld [vmem:[%s1665_s2 + $0x8] sm:$0xff]  ;;  %vm206_vm1 = vcmask 31744   ;;  %v1088_v42 = vmov 683565275  }
  0x15   : > { %188 = vperm.xlu1 %1022, %v174_v1   ;;  %178 = vperm.xlu0 %1021, %v172_v2   ;;  %s942_s29 = sshll.u32 %s163_s28, 1  ;;  %v1089_v44 = vmov 2475754826   ;;  %v1090_v48 = vmov 2131351028   ;;  %s861_s16 = scalar_lea.sflag [#allocation3], %s159_s20 }
  0x16   : > { %s165_s5 = scalar_lea.vmem %s1664_s1, %s942_s29  ;;  %v1091_v51 = vmov 2102212464   ;;  %v1092_v54 = vmov 920167782   ;;  %v1093_v57 = vmov 1326507024   ;;  %s871_s29 = scalar_lea.hbm %s1666_s3, %s966_s26 }
  0x17   : > { %v171_v3 = vld [vmem:[%s165_s5] sm:$0x3]  ;;  %s874_s4 = sshll.u32 %s871_s29, 4  ;;  %s875_s4 = int_to_ptr.hbm [resolvable:$true] %s874_s4 }
  0x18   : > { %v215_v5 = vsel %vm213_vm0, %v171_v3, 0  ;;  %s1037_s5 = sshra.s32 %s875_s4, 4  ;;  %s1038_s5 = int_to_ptr.hbm [resolvable:$true] %s1037_s5 }
  0x19   : > { %224 = vmatpush.bf16.msra.mxu0 %v215_v5  ;;  %971 = vmatpush.bf16.msra.mxu1 %v215_v5  ;;  %s1039_s6 = scalar_lea.hbm %s1038_s5, 32  ;;  %p1044_p0 = scmp.lt.s32.totalorder %s1038_s5, %s1666_s3 }
  0x1a   : > { %p1040_p11 = scmp.ne.s32.totalorder %s1038_s5, %s1039_s6  ;;  %p1045_p1 = scmp.lt.s32.totalorder %s1043_s9, %s1039_s6 }
  0x1c   : > { %951 = vmatmul.msk.bf16.vlgmr.msra.gmra.mxu0 %vm206_vm1, %v969_v4  ;;  %952 = vmatmul.msk.bf16.vlgmr.msra.gmra.mxu1 %vm206_vm1, %v970_v6  ;;  %p1041_p12 = pnand %p1040_p11, %p1155_p5  ;;  %p1046_p2 = por %p1045_p1, %p1044_p0 }
  0x1d   : > { %193 = vperm.xlu1 %1022, %v175_v7   ;;  %183 = vperm.xlu0 %1021, %v173_v8  }
  0x1e   : > { %p1042_p13 = pneg %p1041_p12 }
  0x20   : > { %p1047_p3 = pnand %p1046_p2, %p1042_p13 }
  0x87   : > { %v189_v9 = vpop.permute.xlu1 %188  ;;  %v179_v10 = vpop.permute.xlu0 %178 }
  0x8f   : > { %v184_v33 = vpop.permute.xlu0 %183 }
  0x99   : > { %v226_v11 = vpop.f32.mrf.mxu0  ;;  %v231_v12 = vpop.f32.mrf.mxu1 }
  0x9a   : > { %v1190_v13 = vadd.f32 %v226_v11, %v179_v10  ;;  %v1192_v14 = vadd.f32 %v231_v12, %v189_v9 }
  0x9c   : > { %v236_v15 = vand.u32 2147483647, %v1190_v13  ;;  %v239_v16 = vand.u32 2139095040, %v1190_v13  ;;  %v546_v17 = vand.u32 2147483647, %v1192_v14  ;;  %v549_v18 = vand.u32 2139095040, %v1192_v14 }
  0x9e   : > { %v240_v19 = vshrl.u32 %v239_v16, 23  ;;  %v243_v20 = vand.u32 8388607, %v236_v15  ;;  %v550_v21 = vshrl.u32 %v549_v18, 23  ;;  %v553_v22 = vand.u32 8388607, %v546_v17 }
  0xa0   : > { %v953_v23 = vadd.s32 4294967169, %v240_v19  ;;  %v244_v24 = vor.u32 8388608, %v243_v20  ;;  %v959_v25 = vadd.s32 4294967169, %v550_v21  ;;  %v554_v26 = vor.u32 8388608, %v553_v22 }
  0xa1   : > { %v228_v30 = vpop.f32.mrf.mxu0 }
  0xa2   : > { %v246_v27 = vadd.s32 1, %v953_v23  ;;  %v556_v28 = vadd.s32 1, %v959_v25  ;;  %v1202_v29 = vshll.u32 %v244_v24, 8  ;;  %v1204_v32 = vshll.u32 %v554_v26, 8 }
  0xa3   : > { %v1206_v36 = vadd.f32 %v228_v30, %v184_v33 }
  0xa4   : > { %vm247_vm2 = vcmp.gt.s32.totalorder %v246_v27, 0  ;;  %vm557_vm3 = vcmp.gt.s32.totalorder %v556_v28, 0  ;;  %v1209_v38 = vand.u32 65535, %v1202_v29  ;;  %v1212_v39 = vshrl.u32 %v1202_v29, 16 }
  0xa5   : > { %v248_v31 = vsel %vm247_vm2, %v246_v27, 0  ;;  %v558_v35 = vsel %vm557_vm3, %v556_v28, 0  ;;  %v1221_v46 = vand.u32 65535, %v1204_v32  ;;  %vm238_vm3 = vcmp.lt.s32.totalorder %v1190_v13, 0 }
  0xa6   : > { %v250_v34 = vand.u32 31, %v248_v31  ;;  %v1214_v40 = vand.u32 31, %v558_v35  ;;  %v1216_v41 = vshrl.u32 %v248_v31, 5  ;;  %v1263_v26 = vshrl.u32 %v558_v35, 5 }
  0xa8   : > { %v251_v37 = vsub.s32 32, %v250_v34  ;;  %v253_v43 = vshll.u32 %v1088_v42, %v250_v34  ;;  %v256_v45 = vshll.u32 %v1089_v44, %v250_v34  ;;  %v259_v50 = vshll.u32 %v1090_v48, %v250_v34 }
  0xa9   : > { %v262_v53 = vshll.u32 %v1091_v51, %v250_v34  ;;  %v265_v56 = vshll.u32 %v1092_v54, %v250_v34  ;;  %v1232_v62 = vsub.s32 32, %v1214_v40  ;;  %vm268_vm4 = vcmp.lt.s32.totalorder %v1216_v41, 1 }
  0xaa   : > { %v254_v47 = vshrl.u32 %v1089_v44, %v251_v37  ;;  %v257_v49 = vshrl.u32 %v1090_v48, %v251_v37  ;;  %v260_v52 = vshrl.u32 %v1091_v51, %v251_v37  ;;  %v263_v55 = vshrl.u32 %v1092_v54, %v251_v37 }
  0xab   : > { %v266_v58 = vshrl.u32 %v1093_v57, %v251_v37  ;;  %vm269_vm5 = vcmp.lt.s32.totalorder %v1216_v41, 2  ;;  %v252_v2 = vshrl.u32 %v1088_v42, %v251_v37  ;;  %vm271_vm6 = vcmp.lt.s32.totalorder %v1216_v41, 4 }
  0xac   : > { %v255_v59 = vor.u32 %v254_v47, %v253_v43  ;;  %v258_v60 = vor.u32 %v257_v49, %v256_v45  ;;  %v261_v61 = vor.u32 %v260_v52, %v259_v50  ;;  %v264_v63 = vor.u32 %v263_v55, %v262_v53 }
  0xad   : > { %v267_v1 = vor.u32 %v266_v58, %v265_v56  ;;  %vm270_vm7 = vcmp.lt.s32.totalorder %v1216_v41, 3  ;;  %v563_v7 = vshll.u32 %v1088_v42, %v1214_v40  ;;  %v564_v11 = vshrl.u32 %v1089_v44, %v1232_v62 }
  0xae   : > { %v276_v3 = vsel %vm268_vm4, %v255_v59, %v258_v60  ;;  %v280_v4 = vsel %vm268_vm4, %v258_v60, %v261_v61  ;;  %v277_v5 = vsel %vm271_vm6, %v264_v63, 920167782  ;;  %v273_v8 = vsel %vm271_vm6, %v261_v61, 2102212464 }
  0xaf   : > { %v281_v6 = vsel %vm271_vm6, %v267_v1, 1326507024  ;;  %v278_v9 = vsel %vm270_vm7, %v261_v61, %v277_v5  ;;  %v566_v18 = vshll.u32 %v1089_v44, %v1214_v40  ;;  %v567_v19 = vshrl.u32 %v1090_v48, %v1232_v62 }
  0xb0   : > { %v282_v10 = vsel %vm270_vm7, %v264_v63, %v281_v6  ;;  %v279_v12 = vsel %vm269_vm5, %v276_v3, %v278_v9  ;;  %v272_v24 = vsel %vm268_vm4, %v252_v2, %v255_v59  ;;  %v274_v25 = vsel %vm270_vm7, %v258_v60, %v273_v8 }
  0xb1   : > { %v283_v16 = vsel %vm269_vm5, %v280_v4, %v282_v10  ;;  %v309_v22 = vand.u32 65535, %v279_v12  ;;  %v310_v23 = vshrl.u32 %v279_v12, 16  ;;  %v1265_v27 = vor.u32 %v564_v11, %v563_v7 }
  0xb2   : > { %v287_v20 = vand.u32 65535, %v283_v16  ;;  %v288_v21 = vshrl.u32 %v283_v16, 16  ;;  %v1269_v31 = vor.u32 %v567_v19, %v566_v18  ;;  %v570_v33 = vshrl.u32 %v1091_v51, %v1232_v62 }
  0xb3   : > { %v312_v37 = vmul.u32 %v310_v23, %v1209_v38  ;;  %v313_v43 = vmul.u32 %v309_v22, %v1212_v39  ;;  %v569_v35 = vshll.u32 %v1090_v48, %v1214_v40  ;;  %v311_v49 = vmul.u32 %v309_v22, %v1209_v38 }
  0xb4   : > { %v290_v28 = vmul.u32 %v288_v21, %v1209_v38  ;;  %v291_v30 = vmul.u32 %v287_v20, %v1212_v39  ;;  %v289_v34 = vmul.u32 %v287_v20, %v1209_v38  ;;  %v292_v45 = vmul.u32 %v288_v21, %v1212_v39 }
  0xb5   : > { %v314_v50 = vmul.u32 %v310_v23, %v1212_v39  ;;  %v315_v56 = vshll.u32 %v312_v37, 16  ;;  %v317_v59 = vshll.u32 %v313_v43, 16  ;;  %v571_v60 = vor.u32 %v570_v33, %v569_v35 }
  0xb6   : > { %v293_v47 = vshll.u32 %v290_v28, 16  ;;  %v294_v52 = vshrl.u32 %v290_v28, 16  ;;  %v295_v53 = vshll.u32 %v291_v30, 16  ;;  %v296_v55 = vshrl.u32 %v291_v30, 16 }
  0xb7   : > { %vm319_vm9 = vc.u32 %v311_v49, %v315_v56  ;;  %v321_v63 = vadd.s32 %v315_v56, %v311_v49  ;;  %v573_v1 = vshrl.u32 %v1092_v54, %v1232_v62  ;;  %v572_v39 = vshll.u32 %v1091_v51, %v1214_v40 }
  0xb8   : > { %vm297_vm8 = vc.u32 %v289_v34, %v293_v47  ;;  %v299_v58 = vadd.s32 %v293_v47, %v289_v34  ;;  %v320_v38 = vsel %vm319_vm9, 1, %v1087_v0  ;;  %v575_v5 = vshll.u32 %v1092_v54, %v1214_v40 }
  0xb9   : > { %v298_v61 = vsel %vm297_vm8, 1, %v1087_v0  ;;  %v322_v4 = vadd.s32 %v320_v38, %v314_v50  ;;  %vm323_vm11 = vc.u32 %v321_v63, %v317_v59  ;;  %v574_v8 = vor.u32 %v573_v1, %v572_v39 }
  0xba   : > { %v300_v2 = vadd.s32 %v298_v61, %v292_v45  ;;  %vm301_vm10 = vc.u32 %v299_v58, %v295_v53  ;;  %v324_v7 = vsel %vm323_vm11, 1, %v1087_v0  ;;  %v576_v9 = vshrl.u32 %v1093_v57, %v1232_v62 }
  0xbb   : > { %v302_v3 = vsel %vm301_vm10, 1, %v1087_v0  ;;  %v316_v10 = vshrl.u32 %v312_v37, 16  ;;  %v318_v11 = vshrl.u32 %v313_v43, 16  ;;  %v1293_v12 = vadd.s32 %v321_v63, %v317_v59 }
  0xbc   : > { %v304_v6 = vadd.s32 %v302_v3, %v300_v2  ;;  %v326_v16 = vadd.s32 %v324_v7, %v322_v4  ;;  %v577_v19 = vor.u32 %v576_v9, %v575_v5  ;;  %vm578_vm12 = vcmp.lt.s32.totalorder %v1263_v26, 1 }
  0xbd   : > { %vm581_vm13 = vcmp.lt.s32.totalorder %v1263_v26, 4  ;;  %vm580_vm14 = vcmp.lt.s32.totalorder %v1263_v26, 3  ;;  %v586_v40 = vsel %vm578_vm12, %v1265_v27, %v1269_v31  ;;  %vm579_vm15 = vcmp.lt.s32.totalorder %v1263_v26, 2 }
  0xbe   : > { %v305_v18 = vadd.s32 %v304_v6, %v294_v52  ;;  %v327_v20 = vadd.s32 %v326_v16, %v316_v10  ;;  %v587_v21 = vsel %vm581_vm13, %v574_v8, 920167782  ;;  %v590_v28 = vsel %vm578_vm12, %v1269_v31, %v571_v60 }
  0xbf   : > { %v588_v23 = vsel %vm580_vm14, %v571_v60, %v587_v21  ;;  %v275_v30 = vsel %vm269_vm5, %v272_v24, %v274_v25  ;;  %v591_v37 = vsel %vm581_vm13, %v577_v19, 1326507024  ;;  %v596_v35 = vshrl.u32 %v1204_v32, 16 }
  0xc0   : > { %v1304_v22 = vadd.s32 %v305_v18, %v296_v55  ;;  %v328_v33 = vadd.s32 %v327_v20, %v318_v11  ;;  %v589_v34 = vsel %vm579_vm15, %v586_v40, %v588_v23  ;;  %v592_v43 = vsel %vm580_vm14, %v574_v8, %v591_v37 }
  0xc1   : > { %v619_v45 = vand.u32 65535, %v589_v34  ;;  %v593_v41 = vsel %vm579_vm15, %v590_v28, %v592_v43  ;;  %v620_v24 = vshrl.u32 %v589_v34, 16  ;;  %v394_v25 = vand.u32 2139095040, %v1206_v36 }
  0xc2   : > { %vm331_vm0 = vc.u32 %v1304_v22, %v1293_v12  ;;  %v332_v47 = vadd.s32 1, %v328_v33  ;;  %v329_v49 = vmul.u32 %v1202_v29, %v275_v30  ;;  %v597_v50 = vand.u32 65535, %v593_v41 }
  0xc3   : > { %v598_v52 = vshrl.u32 %v593_v41, 16  ;;  %v562_v55 = vshrl.u32 %v1088_v42, %v1232_v62  ;;  %v622_v56 = vmul.u32 %v620_v24, %v1221_v46  ;;  %v623_v58 = vmul.u32 %v619_v45, %v596_v35 }
  0xc4   : > { %v333_v53 = vsel %vm331_vm0, %v332_v47, %v328_v33  ;;  %v583_v61 = vsel %vm581_vm13, %v571_v60, 2102212464  ;;  %v601_v1 = vmul.u32 %v597_v50, %v596_v35  ;;  %v621_v2 = vmul.u32 %v619_v45, %v1221_v46 }
  0xc5   : > { %v334_v59 = vadd.s32 %v333_v53, %v329_v49  ;;  %v600_v63 = vmul.u32 %v598_v52, %v1221_v46  ;;  %v624_v38 = vmul.u32 %v620_v24, %v596_v35  ;;  %v625_v29 = vshll.u32 %v622_v56, 16 }
  0xc6   : > { %v395_v39 = vshrl.u32 %v394_v25, 23  ;;  %v599_v4 = vmul.u32 %v597_v50, %v1221_v46  ;;  %v602_v5 = vmul.u32 %v598_v52, %v596_v35  ;;  %v605_v6 = vshll.u32 %v601_v1, 16 }
  0xc7   : > { %v335_v3 = vadd.s32 536870912, %v334_v59  ;;  %v603_v62 = vshll.u32 %v600_v63, 16  ;;  %v627_v7 = vshll.u32 %v623_v58, 16  ;;  %vm629_vm1 = vc.u32 %v621_v2, %v625_v29 }
  0xc8   : > { %v631_v8 = vadd.s32 %v625_v29, %v621_v2  ;;  %v630_v10 = vsel %vm629_vm1, 1, %v1087_v0  ;;  %v582_v46 = vsel %vm578_vm12, %v562_v55, %v1265_v27  ;;  %v584_v20 = vsel %vm580_vm14, %v1269_v31, %v583_v61 }
  0xc9   : > { %v336_v9 = vshrl.u32 %v335_v3, 30  ;;  %vm607_vm2 = vc.u32 %v599_v4, %v603_v62  ;;  %v609_v60 = vadd.s32 %v603_v62, %v599_v4  ;;  %v632_v16 = vadd.s32 %v630_v10, %v624_v38 }
  0xca   : > { %v608_v11 = vsel %vm607_vm2, 1, %v1087_v0  ;;  %vm633_vm4 = vc.u32 %v631_v8, %v627_v7  ;;  %v956_v23 = vadd.s32 4294967169, %v395_v39  ;;  %v604_v30 = vshrl.u32 %v600_v63, 16 }
  0xcb   : > { %v337_v18 = vshll.u32 %v336_v9, 30  ;;  %v610_v19 = vadd.s32 %v608_v11, %v602_v5  ;;  %vm611_vm5 = vc.u32 %v609_v60, %v605_v6  ;;  %v634_v21 = vsel %vm633_vm4, 1, %v1087_v0 }
  0xcc   : > { %v612_v40 = vsel %vm611_vm5, 1, %v1087_v0  ;;  %v636_v34 = vadd.s32 %v634_v21, %v632_v16  ;;  %v360_v37 = vsub.s32 4, %v336_v9  ;;  %v626_v43 = vshrl.u32 %v622_v56, 16 }
  0xcd   : > { %v338_v28 = vsub.s32 %v334_v59, %v337_v18  ;;  %v614_v33 = vadd.s32 %v612_v40, %v610_v19  ;;  %v391_v35 = vand.u32 2147483647, %v1206_v36  ;;  %v401_v27 = vadd.s32 1, %v956_v23 }
  0xce   : > { %v606_v47 = vshrl.u32 %v601_v1, 16  ;;  %v585_v31 = vsel %vm579_vm15, %v582_v46, %v584_v20  ;;  %v628_v24 = vshrl.u32 %v623_v58, 16  ;;  %v637_v25 = vadd.s32 %v636_v34, %v626_v43 }
  0xcf   : > { %vm339_vm6 = vcmp.lt.s32.totalorder %v338_v28, 0  ;;  %v340_v45 = vsub.s32 0, %v338_v28  ;;  %v615_v41 = vadd.s32 %v614_v33, %v604_v30  ;;  %vm402_vm7 = vcmp.gt.s32.totalorder %v401_v27, 0 }
  0xd0   : > { %v1351_v52 = vadd.s32 %v631_v8, %v627_v7  ;;  %v403_v53 = vsel %vm402_vm7, %v401_v27, 0  ;;  %v361_v56 = vsel %vm238_vm3, %v360_v37, %v336_v9  ;;  %v638_v59 = vadd.s32 %v637_v25, %v628_v24 }
  0xd1   : > { %v341_v49 = vsel %vm339_vm6, %v340_v45, %v338_v28  ;;  %v1349_v50 = vadd.s32 %v615_v41, %v606_v47  ;;  %v405_v61 = vand.u32 31, %v403_v53  ;;  %vm1357_vm8 = vcmp.le.f32.partialorder %v236_v15, 0.7853982 }
  0xd2   : > { %v342_v55 = vclz %v341_v49  ;;  %v642_v63 = vadd.s32 1, %v638_v59  ;;  %v330_v2 = vadd.s32 %v1293_v12, %v1304_v22  ;;  %v363_v38 = vsel %vm1357_vm8, 0, %v361_v56 }
  0xd3   : > { %vm641_vm9 = vc.u32 %v1349_v50, %v1351_v52  ;;  %v1363_v1 = vsub.s32 32, %v405_v61  ;;  %v639_v29 = vmul.u32 %v1204_v32, %v585_v31  ;;  %v398_v15 = vand.u32 8388607, %v391_v35 }
  0xd4   : > { %v954_v58 = vadd.s32 4294967294, %v342_v55  ;;  %v643_v39 = vsel %vm641_vm9, %v642_v63, %v638_v59  ;;  %v1372_v3 = vshrl.u32 %v403_v53, 5  ;;  %v408_v4 = vshll.u32 %v1088_v42, %v405_v61  ;;  %v233_v55 = vpop.f32.mrf.mxu1 }
  0xd5   : > { %v644_v62 = vadd.s32 %v643_v39, %v639_v29  ;;  %v409_v6 = vshrl.u32 %v1089_v44, %v1363_v1  ;;  %v412_v12 = vshrl.u32 %v1090_v48, %v1363_v1  ;;  %v411_v32 = vshll.u32 %v1089_v44, %v405_v61 }
  0xd6   : > { %vm955_vm10 = vcmp.lt.s32.totalorder %v954_v58, 0  ;;  %v415_v8 = vshrl.u32 %v1091_v51, %v1363_v1  ;;  %v414_v60 = vshll.u32 %v1090_v48, %v405_v61  ;;  %v417_v10 = vshll.u32 %v1091_v51, %v405_v61 }
  0xd7   : > { %v345_v5 = vsel %vm955_vm10, 0, %v954_v58  ;;  %v645_v9 = vadd.s32 536870912, %v644_v62  ;;  %v418_v11 = vshrl.u32 %v1092_v54, %v1363_v1  ;;  %v421_v19 = vshrl.u32 %v1093_v57, %v1363_v1 }
  0xd8   : > { %v346_v22 = vsub.s32 32, %v345_v5  ;;  %v350_v7 = vsub.s32 4294967266, %v345_v5  ;;  %v347_v16 = vshll.u32 %v338_v28, %v345_v5  ;;  %v410_v40 = vor.u32 %v409_v6, %v408_v4 }
  0xd9   : > { %v1388_v20 = vshrl.u32 %v645_v9, 30  ;;  %v1390_v21 = vor.u32 %v412_v12, %v411_v32  ;;  %v419_v23 = vor.u32 %v418_v11, %v417_v10  ;;  %v416_v34 = vor.u32 %v415_v8, %v414_v60 }
  0xda   : > { %v348_v18 = vshrl.u32 %v330_v2, %v346_v22  ;;  %v351_v46 = vadd.s32 127, %v350_v7  ;;  %v420_v37 = vshll.u32 %v1092_v54, %v405_v61  ;;  %v380_v43 = vadd.s32 3, %v363_v38  ;;  %v194_v61 = vpop.permute.xlu1 %193 }
  0xdb   : > { %v647_v27 = vshll.u32 %v1388_v20, 30  ;;  %v399_v28 = vor.u32 8388608, %v398_v15  ;;  %vm423_vm11 = vcmp.lt.s32.totalorder %v1372_v3, 1  ;;  %vm426_vm12 = vcmp.lt.s32.totalorder %v1372_v3, 4 }
  0xdc   : > { %v349_v30 = vor.u32 %v348_v18, %v347_v16  ;;  %v352_v33 = vshll.u32 %v351_v46, 23  ;;  %v422_v47 = vor.u32 %v421_v19, %v420_v37  ;;  %vm425_vm13 = vcmp.lt.s32.totalorder %v1372_v3, 3 }
  0xdd   : > { %v1396_v41 = vsub.s32 %v644_v62, %v647_v27  ;;  %v431_v31 = vsel %vm423_vm11, %v410_v40, %v1390_v21  ;;  %v432_v24 = vsel %vm426_vm12, %v419_v23, 920167782  ;;  %vm424_vm15 = vcmp.lt.s32.totalorder %v1372_v3, 2 }
  0xde   : > { %v353_v45 = vor.u32 4788187, %v352_v33  ;;  %v356_v49 = vcvt.s32.f32 %v349_v30  ;;  %v433_v53 = vsel %vm425_vm13, %v416_v34, %v432_v24  ;;  %v1409_v59 = vshll.u32 %v399_v28, 8 }
  0xdf   : > { %vm649_vm14 = vcmp.lt.s32.totalorder %v1396_v41, 0  ;;  %v650_v56 = vsub.s32 0, %v1396_v41  ;;  %v1413_v63 = vsel %vm424_vm15, %v431_v31, %v433_v53  ;;  %v435_v2 = vsel %vm423_vm11, %v1390_v21, %v416_v34 }
  0xe0   : > { %v354_v25 = vand.u32 2147483647, %v353_v45  ;;  %v436_v38 = vsel %vm426_vm12, %v422_v47, 1326507024  ;;  %v1420_v29 = vand.u32 3, %v380_v43  ;;  %v1425_v4 = vadd.f32 %v233_v55, %v194_v61 }
  0xe1   : > { %v651_v15 = vsel %vm649_vm14, %v650_v56, %v1396_v41  ;;  %v437_v39 = vsel %vm425_vm13, %v419_v23, %v436_v38  ;;  %v407_v6 = vshrl.u32 %v1088_v42, %v1363_v1  ;;  %v440_v22 = vand.u32 65535, %v1409_v59 }
  0xe2   : > { %v357_v58 = vmul.f32 %v356_v49, %v354_v25  ;;  %v652_v62 = vclz %v651_v15  ;;  %v438_v12 = vsel %vm424_vm15, %v435_v2, %v437_v39  ;;  %v441_v7 = vshrl.u32 %v1409_v59, 16 }
  0xe3   : > { %v442_v32 = vand.u32 65535, %v438_v12  ;;  %v464_v8 = vand.u32 65535, %v1413_v63  ;;  %v443_v10 = vshrl.u32 %v438_v12, 16  ;;  %v465_v11 = vshrl.u32 %v1413_v63, 16 }
  0xe4   : > { %v358_v5 = vxor.u32 2147483648, %v357_v58  ;;  %v960_v60 = vadd.s32 4294967294, %v652_v62  ;;  %v640_v16 = vadd.s32 %v1351_v52, %v1349_v50  ;;  %v670_v18 = vsub.s32 4, %v1388_v20 }
  0xe5   : > { %v1445_v46 = vmul.u32 %v442_v32, %v441_v7  ;;  %v1451_v23 = vsel %vm423_vm11, %v407_v6, %v410_v40  ;;  %v445_v30 = vmul.u32 %v443_v10, %v440_v22  ;;  %v428_v26 = vsel %vm426_vm12, %v416_v34, 2102212464 }
  0xe6   : > { %v359_v9 = vsel %vm238_vm3, %v358_v5, %v357_v58  ;;  %vm961_vm0 = vcmp.lt.s32.totalorder %v960_v60, 0  ;;  %v444_v37 = vmul.u32 %v442_v32, %v440_v22  ;;  %v466_v43 = vmul.u32 %v464_v8, %v440_v22 }
  0xe7   : > { %v1440_v1 = vsel %vm1357_vm8, %v1190_v13, %v359_v9  ;;  %v655_v33 = vsel %vm961_vm0, 0, %v960_v60  ;;  %v1455_v28 = vmul.u32 %v465_v11, %v440_v22  ;;  %v447_v47 = vmul.u32 %v443_v10, %v441_v7 }
  0xe8   : > { %v364_v19 = vmul.f32 %v1440_v1, %v1440_v1  ;;  %v656_v27 = vsub.s32 32, %v655_v33  ;;  %v660_v45 = vsub.s32 4294967266, %v655_v33  ;;  %v448_v31 = vshll.u32 %v445_v30, 16 }
  0xe9   : > { %v450_v24 = vshll.u32 %v1445_v46, 16  ;;  %v657_v49 = vshll.u32 %v1396_v41, %v655_v33  ;;  %v468_v56 = vmul.u32 %v464_v8, %v441_v7  ;;  %v470_v2 = vshll.u32 %v1455_v28, 16 }
  0xea   : > { %v365_v50 = vmul.f32 -0.001358992, %v364_v19  ;;  %v372_v52 = vmul.f32 -0.00019511016, %v364_v19  ;;  %v658_v53 = vshrl.u32 %v640_v16, %v656_v27  ;;  %v661_v55 = vadd.s32 127, %v660_v45 }
  0xeb   : > { %vm452_vm1 = vc.u32 %v444_v37, %v448_v31  ;;  %v454_v34 = vadd.s32 %v448_v31, %v444_v37  ;;  %vm548_vm2 = vcmp.lt.s32.totalorder %v1192_v14, 0  ;;  %v449_v41 = vshrl.u32 %v445_v30, 16 }
  0xec   : > { %v366_v25 = vadd.f32 0.041655596, %v365_v50  ;;  %v373_v40 = vadd.f32 0.008332121, %v372_v52  ;;  %v453_v63 = vsel %vm452_vm1, 1, %v1087_v0  ;;  %v659_v38 = vor.u32 %v658_v53, %v657_v49 }
  0xed   : > { %v662_v15 = vshll.u32 %v661_v55, 23  ;;  %v455_v39 = vadd.s32 %v453_v63, %v447_v47  ;;  %vm456_vm3 = vc.u32 %v454_v34, %v450_v24  ;;  %vm1465_vm4 = vcmp.le.f32.partialorder %v546_v17, 0.7853982 }
  0xee   : > { %v367_v61 = vmul.f32 %v366_v25, %v364_v19  ;;  %v374_v58 = vmul.f32 %v373_v40, %v364_v19  ;;  %v457_v6 = vsel %vm456_vm3, 1, %v1087_v0  ;;  %v469_v8 = vmul.u32 %v465_v11, %v441_v7 }
  0xef   : > { %v663_v22 = vor.u32 4788187, %v662_v15  ;;  %v459_v32 = vadd.s32 %v457_v6, %v455_v39  ;;  %v472_v9 = vshll.u32 %v468_v56, 16  ;;  %vm382_vm5 = vcmp.lt.s32.totalorder %v1420_v29, 2 }
  0xf0   : > { %v368_v5 = vadd.f32 -0.4999988, %v367_v61  ;;  %v375_v62 = vadd.f32 -0.16666654, %v374_v58  ;;  %vm474_vm6 = vc.u32 %v466_v43, %v470_v2  ;;  %v476_v16 = vadd.s32 %v470_v2, %v466_v43 }
  0xf1   : > { %vm379_vm7 = vweird.f32 %v1190_v13  ;;  %v664_v30 = vand.u32 2147483647, %v663_v22  ;;  %v666_v33 = vcvt.s32.f32 %v659_v38  ;;  %v460_v37 = vadd.s32 %v459_v32, %v449_v41 }
  0xf2   : > { %v369_v60 = vmul.f32 %v368_v5, %v364_v19  ;;  %v376_v10 = vmul.f32 %v375_v62, %v364_v19  ;;  %v475_v17 = vsel %vm474_vm6, 1, %v1087_v0  ;;  %vm478_vm8 = vc.u32 %v476_v16, %v472_v9 }
  0xf3   : > { %v477_v27 = vadd.s32 %v475_v17, %v469_v8  ;;  %v667_v7 = vmul.f32 %v666_v33, %v664_v30  ;;  %v429_v11 = vsel %vm425_vm13, %v1390_v21, %v428_v26  ;;  %v451_v19 = vshrl.u32 %v1445_v46, 16 }
  0xf4   : > { %v370_v50 = vadd.f32 1.0, %v369_v60  ;;  %v377_v52 = vadd.f32 1.0, %v376_v10  ;;  %v479_v43 = vsel %vm478_vm8, 1, %v1087_v0  ;;  %v471_v31 = vshrl.u32 %v1455_v28, 16 }
  0xf5   : > { %v481_v24 = vadd.s32 %v479_v43, %v477_v27  ;;  %vm383_vm9 = vcmp.eq.s32.totalorder %v1420_v29, 0  ;;  %vm386_vm10 = vcmp.eq.s32.totalorder %v1420_v29, 2  ;;  %v668_v25 = vxor.u32 2147483648, %v667_v7 }
  0xf6   : > { %v378_v45 = vmul.f32 %v377_v52, %v1440_v1  ;;  %v387_v47 = vxor.u32 2147483648, %v370_v50  ;;  %v1484_v40 = vadd.s32 %v460_v37, %v451_v19  ;;  %v671_v1 = vsel %vm548_vm2, %v670_v18, %v1388_v20 }
  0xf7   : > { %v473_v46 = vshrl.u32 %v468_v56, 16  ;;  %v482_v26 = vadd.s32 %v481_v24, %v471_v31  ;;  %v669_v28 = vsel %vm548_vm2, %v668_v25, %v667_v7  ;;  %v430_v49 = vsel %vm424_vm15, %v1451_v23, %v429_v11 }
  0xf8   : > { %v384_v21 = vxor.u32 2147483648, %v378_v45  ;;  %v1496_v53 = vadd.s32 %v476_v16, %v472_v9  ;;  %v704_v55 = vand.u32 2139095040, %v1425_v4  ;;  %v388_v61 = vsel %vm386_vm10, %v387_v47, %v378_v45 }
  0xf9   : > { %v672_v58 = vsel %vm1465_vm4, %v1192_v14, %v669_v28  ;;  %v483_v20 = vadd.s32 %v482_v26, %v473_v46  ;;  %v673_v63 = vsel %vm1465_vm4, 0, %v671_v1  ;;  %v484_v29 = vmul.u32 %v1409_v59, %v430_v49 }
  0xfa   : > { %v385_v34 = vsel %vm383_vm9, %v370_v50, %v384_v21  ;;  %v674_v56 = vmul.f32 %v672_v58, %v672_v58  ;;  %vm486_vm11 = vc.u32 %v1484_v40, %v1496_v53  ;;  %v705_v3 = vshrl.u32 %v704_v55, 23 }
  0xfb   : > { %v389_v18 = vsel %vm382_vm5, %v385_v34, %v388_v61  ;;  %v487_v2 = vadd.s32 1, %v483_v20  ;;  %v690_v13 = vadd.s32 3, %v673_v63  ;;  %v701_v32 = vand.u32 2147483647, %v1425_v4 }
  0xfc   : > { %v390_v23 = vsel %vm379_vm7, nan, %v389_v18  ;;  %v675_v38 = vmul.f32 -0.001358992, %v674_v56  ;;  %v682_v15 = vmul.f32 -0.00019511016, %v674_v56  ;;  %v962_v39 = vadd.s32 4294967169, %v705_v3 }
  0xfd   : > { %856 = vst [vmem:[%s1510_s25] sm:$0xff] %v390_v23  ;;  %v488_v5 = vsel %vm486_vm11, %v487_v2, %v483_v20  ;;  %v691_v33 = vand.u32 3, %v690_v13  ;;  %v708_v59 = vand.u32 8388607, %v701_v32  ;;  %vm689_vm13 = vweird.f32 %v1192_v14 }
  0xfe   : > { %v676_v62 = vadd.f32 0.041655596, %v675_v38  ;;  %v683_v41 = vadd.f32 0.008332121, %v682_v15  ;;  %v489_v6 = vadd.s32 %v488_v5, %v484_v29  ;;  %v711_v22 = vadd.s32 1, %v962_v39 }
  0xff   : > { %vm692_vm14 = vcmp.lt.s32.totalorder %v691_v33, 2  ;;  %vm693_vm15 = vcmp.eq.s32.totalorder %v691_v33, 0  ;;  %vm696_vm0 = vcmp.eq.s32.totalorder %v691_v33, 2  ;;  %v709_v43 = vor.u32 8388608, %v708_v59 }
 0x100   : > { %v677_v12 = vmul.f32 %v676_v62, %v674_v56  ;;  %v684_v8 = vmul.f32 %v683_v41, %v674_v56  ;;  %v490_v9 = vadd.s32 536870912, %v489_v6  ;;  %vm712_vm12 = vcmp.gt.s32.totalorder %v711_v22, 0 }
 0x101   : > { %v713_v60 = vsel %vm712_vm12, %v711_v22, 0  ;;  %vm1584_vm7 = vcmp.le.f32.partialorder %v391_v35, 0.7853982  ;;  %vm393_vm9 = vcmp.lt.s32.totalorder %v1206_v36, 0 }
 0x102   : > { %v678_v10 = vadd.f32 -0.4999988, %v677_v12  ;;  %v685_v16 = vadd.f32 -0.16666654, %v684_v8  ;;  %v1515_v30 = vshrl.u32 %v490_v9, 30  ;;  %v715_v37 = vand.u32 31, %v713_v60 }
 0x103   : > { %v1523_v24 = vshrl.u32 %v713_v60, 5 }
 0x104   : > { %v679_v17 = vmul.f32 %v678_v10, %v674_v56  ;;  %v686_v50 = vmul.f32 %v685_v16, %v674_v56  ;;  %v492_v52 = vshll.u32 %v1515_v30, 30  ;;  %v1520_v27 = vsub.s32 32, %v715_v37 }
 0x105   : > { %v718_v25 = vshll.u32 %v1088_v42, %v715_v37  ;;  %v721_v28 = vshll.u32 %v1089_v44, %v715_v37  ;;  %v724_v61 = vshll.u32 %v1090_v48, %v715_v37  ;;  %v727_v18 = vshll.u32 %v1091_v51, %v715_v37 }
 0x106   : > { %v680_v7 = vadd.f32 1.0, %v679_v17  ;;  %v687_v11 = vadd.f32 1.0, %v686_v50  ;;  %v493_v19 = vsub.s32 %v489_v6, %v492_v52  ;;  %v719_v21 = vshrl.u32 %v1089_v44, %v1520_v27 }
 0x107   : > { %v722_v1 = vshrl.u32 %v1090_v48, %v1520_v27  ;;  %v725_v49 = vshrl.u32 %v1091_v51, %v1520_v27  ;;  %v730_v56 = vshll.u32 %v1092_v54, %v715_v37  ;;  %v731_v44 = vshrl.u32 %v1093_v57, %v1520_v27 }
 0x108   : > { %v688_v45 = vmul.f32 %v687_v11, %v672_v58  ;;  %v697_v47 = vxor.u32 2147483648, %v680_v7  ;;  %vm494_vm1 = vcmp.lt.s32.totalorder %v493_v19, 0  ;;  %v495_v31 = vsub.s32 0, %v493_v19 }
 0x109   : > { %v728_v58 = vshrl.u32 %v1092_v54, %v1520_v27  ;;  %v1542_v63 = vor.u32 %v719_v21, %v718_v25  ;;  %v1544_v2 = vor.u32 %v722_v1, %v721_v28  ;;  %v1548_v38 = vor.u32 %v725_v49, %v724_v61 }
 0x10a   : > { %v694_v46 = vxor.u32 2147483648, %v688_v45  ;;  %v496_v26 = vsel %vm494_vm1, %v495_v31, %v493_v19  ;;  %v698_v55 = vsel %vm696_vm0, %v697_v47, %v688_v45  ;;  %v732_v29 = vor.u32 %v731_v44, %v730_v56 }
 0x10b   : > { %v497_v34 = vclz %v496_v26  ;;  %v729_v15 = vor.u32 %v728_v58, %v727_v18  ;;  %v485_v51 = vadd.s32 %v1496_v53, %v1484_v40  ;;  %v1553_v54 = vshll.u32 %v709_v43, 8 }
 0x10c   : > { %v695_v20 = vsel %vm693_vm15, %v680_v7, %v694_v46  ;;  %vm733_vm3 = vcmp.lt.s32.totalorder %v1523_v24, 1  ;;  %vm734_vm4 = vcmp.lt.s32.totalorder %v1523_v24, 2  ;;  %vm735_vm5 = vcmp.lt.s32.totalorder %v1523_v24, 3 }
 0x10d   : > { %v699_v3 = vsel %vm692_vm14, %v695_v20, %v698_v55  ;;  %v957_v23 = vadd.s32 4294967294, %v497_v34  ;;  %vm736_vm6 = vcmp.lt.s32.totalorder %v1523_v24, 4  ;;  %v741_v5 = vsel %vm733_vm3, %v1542_v63, %v1544_v2 }
 0x10e   : > { %v700_v48 = vsel %vm689_vm13, nan, %v699_v3  ;;  %v742_v53 = vsel %vm736_vm6, %v729_v15, 920167782  ;;  %v745_v62 = vsel %vm733_vm3, %v1544_v2, %v1548_v38  ;;  %v746_v41 = vsel %vm736_vm6, %v732_v29, 1326507024 }
 0x10f   : > { %858 = vst [vmem:[%s1510_s25 + $0x10] sm:$0xff] %v700_v48  ;;  %vm958_vm2 = vcmp.lt.s32.totalorder %v957_v23, 0  ;;  %v743_v13 = vsel %vm735_vm5, %v1548_v38, %v742_v53  ;;  %v747_v12 = vsel %vm735_vm5, %v729_v15, %v746_v41  ;;  %v750_v60 = vand.u32 65535, %v1553_v54 }
 0x110   : > { %v500_v57 = vsel %vm958_vm2, 0, %v957_v23  ;;  %v744_v8 = vsel %vm734_vm4, %v741_v5, %v743_v13  ;;  %v748_v9 = vsel %vm734_vm4, %v745_v62, %v747_v12  ;;  %v751_v37 = vshrl.u32 %v1553_v54, 16 }
 0x111   : > { %v501_v14 = vsub.s32 32, %v500_v57  ;;  %v505_v39 = vsub.s32 4294967266, %v500_v57  ;;  %v502_v40 = vshll.u32 %v493_v19, %v500_v57  ;;  %v752_v33 = vand.u32 65535, %v748_v9 }
 0x112   : > { %v753_v59 = vshrl.u32 %v748_v9, 16  ;;  %v774_v17 = vand.u32 65535, %v744_v8  ;;  %v775_v50 = vshrl.u32 %v744_v8, 16  ;;  %v515_v48 = vsub.s32 4, %v1515_v30 }
 0x113   : > { %v503_v6 = vshrl.u32 %v485_v51, %v501_v14  ;;  %v506_v22 = vadd.s32 127, %v505_v39  ;;  %v756_v19 = vmul.u32 %v752_v33, %v751_v37  ;;  %v754_v31 = vmul.u32 %v752_v33, %v750_v60 }
 0x114   : > { %v755_v7 = vmul.u32 %v753_v59, %v750_v60  ;;  %v777_v43 = vmul.u32 %v775_v50, %v750_v60  ;;  %v757_v21 = vmul.u32 %v753_v59, %v751_v37  ;;  %v776_v1 = vmul.u32 %v774_v17, %v750_v60 }
 0x115   : > { %v504_v10 = vor.u32 %v503_v6, %v502_v40  ;;  %v507_v16 = vshll.u32 %v506_v22, 23  ;;  %v778_v46 = vmul.u32 %v774_v17, %v751_v37  ;;  %v760_v49 = vshll.u32 %v756_v19, 16 }
 0x116   : > { %v758_v25 = vshll.u32 %v755_v7, 16  ;;  %v780_v26 = vshll.u32 %v777_v43, 16  ;;  %v779_v34 = vmul.u32 %v775_v50, %v751_v37  ;;  %v759_v15 = vshrl.u32 %v755_v7, 16 }
 0x117   : > { %v508_v52 = vor.u32 4788187, %v507_v16  ;;  %v511_v47 = vcvt.s32.f32 %v504_v10  ;;  %v782_v56 = vshll.u32 %v778_v46, 16  ;;  %v717_v57 = vshrl.u32 %v1088_v42, %v1520_v27 }
 0x118   : > { %vm762_vm8 = vc.u32 %v754_v31, %v758_v25  ;;  %v764_v55 = vadd.s32 %v758_v25, %v754_v31  ;;  %vm784_vm10 = vc.u32 %v776_v1, %v780_v26  ;;  %v786_v44 = vadd.s32 %v780_v26, %v776_v1 }
 0x119   : > { %v509_v45 = vand.u32 2147483647, %v508_v52  ;;  %v763_v35 = vsel %vm762_vm8, 1, %v1087_v0  ;;  %v785_v20 = vsel %vm784_vm10, 1, %v1087_v0  ;;  %v738_v14 = vsel %vm736_vm6, %v1548_v38, 2102212464 }
 0x11a   : > { %v765_v58 = vadd.s32 %v763_v35, %v757_v21  ;;  %vm766_vm11 = vc.u32 %v764_v55, %v760_v49  ;;  %v787_v3 = vadd.s32 %v785_v20, %v779_v34  ;;  %vm788_vm12 = vc.u32 %v786_v44, %v782_v56 }
 0x11b   : > { %v512_v28 = vmul.f32 %v511_v47, %v509_v45  ;;  %v767_v18 = vsel %vm766_vm11, 1, %v1087_v0  ;;  %v761_v5 = vshrl.u32 %v756_v19, 16  ;;  %v789_v53 = vsel %vm788_vm12, 1, %v1087_v0 }
 0x11c   : > { %v769_v29 = vadd.s32 %v767_v18, %v765_v58  ;;  %v737_v62 = vsel %vm733_vm3, %v717_v57, %v1542_v63  ;;  %v781_v41 = vshrl.u32 %v777_v43, 16  ;;  %v791_v6 = vadd.s32 %v789_v53, %v787_v3 }
 0x11d   : > { %v513_v61 = vxor.u32 2147483648, %v512_v28  ;;  %v739_v42 = vsel %vm735_vm5, %v1544_v2, %v738_v14  ;;  %v516_v38 = vsel %vm393_vm9, %v515_v48, %v1515_v30  ;;  %v783_v12 = vshrl.u32 %v778_v46, 16 }
 0x11e   : > { %v770_v40 = vadd.s32 %v769_v29, %v759_v15  ;;  %v792_v8 = vadd.s32 %v791_v6, %v781_v41  ;;  %v790_v60 = vadd.s32 %v786_v44, %v782_v56  ;;  %v740_v63 = vsel %vm734_vm4, %v737_v62, %v739_v42 }
 0x11f   : > { %v514_v23 = vsel %vm393_vm9, %v513_v61, %v512_v28  ;;  %v518_v16 = vsel %vm1584_vm7, 0, %v516_v38  ;;  %v794_v30 = vmul.u32 %v1553_v54, %v740_v63  ;;  %vm534_vm1 = vweird.f32 %v1206_v36 }
 0x120   : > { %v517_v51 = vsel %vm1584_vm7, %v1206_v36, %v514_v23  ;;  %v771_v27 = vadd.s32 %v770_v40, %v761_v5  ;;  %v793_v10 = vadd.s32 %v792_v8, %v783_v12  ;;  %v535_v50 = vadd.s32 3, %v518_v16 }
 0x121   : > { %v519_v39 = vmul.f32 %v517_v51, %v517_v51  ;;  %vm703_vm4 = vcmp.lt.s32.totalorder %v1425_v4, 0  ;;  %vm702_vm5 = vcmp.le.f32.partialorder %v701_v32, 0.7853982  ;;  %vm844_vm9 = vweird.f32 %v1425_v4 }
 0x122   : > { %vm796_vm13 = vc.u32 %v771_v27, %v790_v60  ;;  %v797_v2 = vadd.s32 1, %v793_v10  ;;  %v536_v31 = vand.u32 3, %v535_v50  ;;  %v795_v18 = vadd.s32 %v790_v60, %v771_v27 }
 0x123   : > { %v520_v22 = vmul.f32 -0.001358992, %v519_v39  ;;  %v527_v13 = vmul.f32 -0.00019511016, %v519_v39 }
 0x124   : > { %v798_v52 = vsel %vm796_vm13, %v797_v2, %v793_v10  ;;  %vm538_vm14 = vcmp.eq.s32.totalorder %v536_v31, 0  ;;  %vm541_vm15 = vcmp.eq.s32.totalorder %v536_v31, 2  ;;  %vm537_vm0 = vcmp.lt.s32.totalorder %v536_v31, 2 }
 0x125   : > { %v521_v0 = vadd.f32 0.041655596, %v520_v22  ;;  %v528_v9 = vadd.f32 0.008332121, %v527_v13  ;;  %v799_v43 = vadd.s32 %v798_v52, %v794_v30 }
 0x127   : > { %v522_v33 = vmul.f32 %v521_v0, %v519_v39  ;;  %v529_v59 = vmul.f32 %v528_v9, %v519_v39  ;;  %v800_v47 = vadd.s32 536870912, %v799_v43 }
 0x129   : > { %v523_v37 = vadd.f32 -0.4999988, %v522_v33  ;;  %v530_v17 = vadd.f32 -0.16666654, %v529_v59  ;;  %v801_v21 = vshrl.u32 %v800_v47, 30 }
 0x12b   : > { %v524_v7 = vmul.f32 %v523_v37, %v519_v39  ;;  %v531_v19 = vmul.f32 %v530_v17, %v519_v39  ;;  %v802_v46 = vshll.u32 %v801_v21, 30  ;;  %v825_v40 = vsub.s32 4, %v801_v21 }
 0x12d   : > { %v525_v45 = vadd.f32 1.0, %v524_v7  ;;  %v532_v24 = vadd.f32 1.0, %v531_v19  ;;  %v803_v28 = vsub.s32 %v799_v43, %v802_v46  ;;  %v826_v22 = vsel %vm703_vm4, %v825_v40, %v801_v21 }
 0x12e   : > { %v828_v27 = vsel %vm702_vm5, 0, %v826_v22 }
 0x12f   : > { %v533_v25 = vmul.f32 %v532_v24, %v517_v51  ;;  %v542_v11 = vxor.u32 2147483648, %v525_v45  ;;  %vm804_vm2 = vcmp.lt.s32.totalorder %v803_v28, 0  ;;  %v805_v35 = vsub.s32 0, %v803_v28 }
 0x130   : > { %v845_v9 = vadd.s32 3, %v828_v27 }
 0x131   : > { %v539_v1 = vxor.u32 2147483648, %v533_v25  ;;  %v543_v54 = vsel %vm541_vm15, %v542_v11, %v533_v25  ;;  %v806_v34 = vsel %vm804_vm2, %v805_v35, %v803_v28 }
 0x132   : > { %v807_v61 = vclz %v806_v34  ;;  %v846_v16 = vand.u32 3, %v845_v9 }
 0x133   : > { %v540_v26 = vsel %vm538_vm14, %v525_v45, %v539_v1 }
 0x134   : > { %v544_v49 = vsel %vm537_vm0, %v540_v26, %v543_v54  ;;  %v963_v58 = vadd.s32 4294967294, %v807_v61  ;;  %vm848_vm6 = vcmp.eq.s32.totalorder %v846_v16, 0  ;;  %vm851_vm7 = vcmp.eq.s32.totalorder %v846_v16, 2 }
 0x135   : > { %v545_v55 = vsel %vm534_vm1, nan, %v544_v49  ;;  %vm847_vm8 = vcmp.lt.s32.totalorder %v846_v16, 2 }
 0x136   : > { %857 = vst [vmem:[%s1510_s25 + $0x8] sm:$0xff] %v545_v55  ;;  %vm964_vm3 = vcmp.lt.s32.totalorder %v963_v58, 0 }
 0x137   : > { %v810_v20 = vsel %vm964_vm3, 0, %v963_v58 }
 0x138   : > { %v811_v56 = vsub.s32 32, %v810_v20  ;;  %v815_v44 = vsub.s32 4294967266, %v810_v20  ;;  %v812_v3 = vshll.u32 %v803_v28, %v810_v20 }
 0x13a   : > { %v813_v23 = vshrl.u32 %v795_v18, %v811_v56  ;;  %v816_v48 = vadd.s32 127, %v815_v44 }
 0x13c   : > { %v814_v15 = vor.u32 %v813_v23, %v812_v3  ;;  %v817_v29 = vshll.u32 %v816_v48, 23 }
 0x13e   : > { %v818_v51 = vor.u32 4788187, %v817_v29  ;;  %v821_v57 = vcvt.s32.f32 %v814_v15 }
 0x140   : > { %v819_v36 = vand.u32 2147483647, %v818_v51 }
 0x142   : > { %v822_v14 = vmul.f32 %v821_v57, %v819_v36 }
 0x144   : > { %v823_v39 = vxor.u32 2147483648, %v822_v14 }
 0x146   : > { %v824_v5 = vsel %vm703_vm4, %v823_v39, %v822_v14 }
 0x147   : > { %v827_v53 = vsel %vm702_vm5, %v1425_v4, %v824_v5 }
 0x148   : > { %v829_v62 = vmul.f32 %v827_v53, %v827_v53 }
 0x14a   : > { %v830_v41 = vmul.f32 -0.001358992, %v829_v62  ;;  %v837_v6 = vmul.f32 -0.00019511016, %v829_v62 }
 0x14c   : > { %v831_v13 = vadd.f32 0.041655596, %v830_v41  ;;  %v838_v42 = vadd.f32 0.008332121, %v837_v6 }
 0x14e   : > { %v832_v38 = vmul.f32 %v831_v13, %v829_v62  ;;  %v839_v12 = vmul.f32 %v838_v42, %v829_v62 }
 0x150   : > { %v833_v8 = vadd.f32 -0.4999988, %v832_v38  ;;  %v840_v0 = vadd.f32 -0.16666654, %v839_v12 }
 0x152   : > { %v834_v32 = vmul.f32 %v833_v8, %v829_v62  ;;  %v841_v60 = vmul.f32 %v840_v0, %v829_v62 }
 0x154   : > { %v835_v63 = vadd.f32 1.0, %v834_v32  ;;  %v842_v10 = vadd.f32 1.0, %v841_v60 }
 0x156   : > { %v843_v33 = vmul.f32 %v842_v10, %v827_v53  ;;  %v852_v59 = vxor.u32 2147483648, %v835_v63 }
 0x158   : > { %v849_v2 = vxor.u32 2147483648, %v843_v33  ;;  %v853_v17 = vsel %vm851_vm7, %v852_v59, %v843_v33 }
 0x15a   : > { %v850_v37 = vsel %vm848_vm6, %v835_v63, %v849_v2 }
 0x15b   : > { %v854_v30 = vsel %vm847_vm8, %v850_v37, %v853_v17 }
 0x15c   : > { %v855_v50 = vsel %vm844_vm9, nan, %v854_v30 }
 0x15d   : > { %859 = vst [vmem:[%s1510_s25 + $0x18] sm:$0xff] %v855_v50 }
 0x15e   : > { %1050 = shalt.err (!%p1047_p3)
}
 0x15f   : > { %s1094_s17 = smov 128   ;;  %s1095_s19 = smov 256  }
 0x160   : > { %s1096_s20 = smov 8  }
 0x161   : > { %972 = dma.vmem_to_hbm [thread:$0]  (%p1155_p5), %s1629_s30, 512, %s875_s4, %s861_s16, %s1094_s17, %s1095_s19, %s1096_s20  }
 0x162 PF: > { %p978_p4 = scmp.ge.s32.totalorder %s1085_s15, 2  ;;  %s889_s24 = sand.u32 1, %s1073_s12  }
 0x163   : > { %s890_s25 = scalar_lea.sflag [#allocation3], %s889_s24 }
 0x164   : > { %p975_p7 = pnand %p978_p4, %p1159_p6 }
 0x166   : > { %p976_p8 = pneg %p975_p7 }
 0x168   : > { %1068 = dma.done.wait (%p976_p8), %s890_s25, 512  }
 0x169   : > { %1070 = vsyncadd (%p976_p8), %s890_s25, 4294966784  ;;  %p13_p9 = scmp.ge.s32.totalorder %s1142_s18, 4   ;;  %s1675_s12 = smov %s1077_s13 }
 0x16a   : > { %s1676_s13 = smov %s1081_s14  ;;  %s1677_s14 = smov %s1153_s21 }
 0x16b   : > { %s1678_s15 = smov %s1142_s18  ;;  %15 = sbr.rel (!%p13_p9) target bundleno = 3 (0x3), region = 67 }
 0x170   :  { %896 = vsyncpa [#allocation3], 1 }
 0x171   :  { %898 = vsyncpa [#allocation3 + $0x1], 1 }

</bundles_post_ra>
